<compile_context>
chip_gen: v5e
topology: v5e:2x2
jax: 0.10.0
libtpu: 0.0.40
codegen_flags: <defaults>
</compile_context>

<pallas_src>
import functools

import jax
import jax.numpy as jnp
from jax.experimental import pallas as pl
from jax.experimental.pallas import tpu as pltpu


# --------------------------------------------------------------------------
# Helpers
# --------------------------------------------------------------------------
def _pack_rows_to_lanes(x, groups):
    """Row-major repack (R, C) -> (R//groups, groups*C) (lane-dense store).

    Bit-identical to x.reshape(R//groups, groups*C), expressed with
    Mosaic-friendly ops only (minor-dim-preserving reshape, static middle-dim
    indexing, lane concatenation).
    """
    r, c = x.shape
    xg = x.reshape(r // groups, groups, c)
    return jnp.concatenate([xg[:, j, :] for j in range(groups)], axis=-1)


def _lane_groups(c, block_rows):
    """How many C-wide rows to pack into one 128-lane output row (1 = off)."""
    if 0 < c < 128 and 128 % c == 0 and block_rows % (128 // c) == 0:
        return 128 // c
    return 1


# --------------------------------------------------------------------------
# 1) Stand-alone LayerNorm kernel (the part PreNorm itself owns).
# --------------------------------------------------------------------------
def _layer_norm_kernel(x_ref, gb_ref, o_ref, *, eps, lane_groups):
    x = x_ref[...]                                        # (rows, C) f32
    mean = jnp.mean(x, axis=-1, keepdims=True)
    xc = x - mean
    var = jnp.mean(xc * xc, axis=-1, keepdims=True)
    xn = xc * jax.lax.rsqrt(var + eps)
    xn = xn * gb_ref[0:1, :] + gb_ref[1:2, :]
    if lane_groups > 1:
        xn = _pack_rows_to_lanes(xn, lane_groups)         # lane-dense store
    o_ref[...] = xn.astype(o_ref.dtype)


def layer_norm(x, gamma, beta, *, eps=1e-5, row_block=None):
    """Pallas LayerNorm over the last dim of an arbitrary-rank array."""
    orig_shape = x.shape
    C = orig_shape[-1]
    rows = 1
    for d in orig_shape[:-1]:
        rows *= d
    x2 = x.reshape(rows, C).astype(jnp.float32)
    gb = jnp.stack([gamma.reshape(-1), beta.reshape(-1)]).astype(jnp.float32)

    if row_block is None:                                 # pack rows per step
        row_block = rows
        for blk in range(min(rows, 1024), 0, -1):
            if rows % blk == 0 and (blk % 8 == 0 or blk == rows):
                row_block = blk
                break
    n_steps = rows // row_block

    g = _lane_groups(C, row_block)
    out_cols = C * g
    out_rows_blk = row_block // g

    out = pl.pallas_call(
        functools.partial(_layer_norm_kernel, eps=eps, lane_groups=g),
        out_shape=jax.ShapeDtypeStruct((rows // g, out_cols), jnp.float32),
        grid_spec=pltpu.PrefetchScalarGridSpec(
            num_scalar_prefetch=0,
            grid=(n_steps,),
            in_specs=[
                pl.BlockSpec((row_block, C), lambda i: (i, 0)),
                pl.BlockSpec((2, C), lambda i: (0, 0)),
            ],
            out_specs=pl.BlockSpec((out_rows_blk, out_cols), lambda i: (i, 0)),
        ),
        compiler_params=pltpu.CompilerParams(
            dimension_semantics=("parallel",),
            vmem_limit_bytes=48 * 1024 * 1024),
    )(x2, gb)
    return out.reshape(orig_shape)


def pre_norm(x, gamma, beta, fn, *, eps=1e-5):
    """Literal PreNorm.forward: fn(LayerNorm(x)).

    `fn` is an arbitrary callable (the wrapped nn.Module) — generically it has
    no Pallas equivalent, so it is applied after the Pallas LayerNorm kernel.
    Use `pre_norm_self_attention` for the fused attention fast path.
    """
    return fn(layer_norm(x, gamma, beta, eps=eps))


# --------------------------------------------------------------------------
# 2) Fused PreNorm(dim, SelfAttention2) kernel (Transformer1 composition).
# --------------------------------------------------------------------------
def _prenorm_attention_kernel(x_ref, gb_ref, wqkv_ref, bqkv_ref,
                              wproj_ref, bproj_ref, o_ref,
                              *, num_heads, seq_len, eps, lane_groups):
    rows, c = x_ref.shape                       # rows = batch_block * seq_len
    bt = rows // seq_len
    hd = c // num_heads

    # ---- PreNorm: LayerNorm over channels, statistics in f32 (VPU/EUP) ----
    x = x_ref[...]                                          # (rows, C) f32
    mean = jnp.mean(x, axis=-1, keepdims=True)
    xc = x - mean
    var = jnp.mean(xc * xc, axis=-1, keepdims=True)
    xn = xc * jax.lax.rsqrt(var + eps)
    xn = xn * gb_ref[0:1, :] + gb_ref[1:2, :]               # (rows, C) f32

    # ---- fn = SelfAttention2, channels-major ("transposed") domain ----
    # ONE fused QKV matmul: Wqkv(3C,C) @ xn^T(C,rows), bf16 operands with f32
    # accumulation. PyTorch (out,in) weight layout is used as-is; attention
    # `scale` was folded into the q rows/bias in the wrapper.
    xn_t = xn.T.astype(jnp.bfloat16)                        # (C, rows)
    qkv_t = jnp.dot(wqkv_ref[...], xn_t,
                    preferred_element_type=jnp.float32)     # (3C, rows) f32
    qkv_t = qkv_t + bqkv_ref[...]                           # bias (3C, 1)

    # Head split = aligned sublane slices + leading-dim reshapes (no lane
    # gathers, no 4-D transposes).
    q_t = qkv_t[0 * c:1 * c, :].astype(jnp.bfloat16).reshape(num_heads, hd, rows)
    k_t = qkv_t[1 * c:2 * c, :].astype(jnp.bfloat16).reshape(num_heads, hd, rows)
    v_t = qkv_t[2 * c:3 * c, :].astype(jnp.bfloat16).reshape(num_heads, hd, rows)

    # Attention is independent per batch element: static loop over the few
    # batch rows packed into this step; heads stay batched on the MXU.
    # TODO(synk): for large seq_len, replace the (heads, N, N) f32 score
    # buffer with KV-tiled online softmax (flash-style) + a "parallel"
    # query-tile grid axis (required on v7x: 64 MiB VMEM / 2 TensorCores).
    # TODO(synk): with N=64 the softmax tiles fill only 64/128 lanes; packing
    # two heads per lane row would halve the exp/VALU work.
    ctx_parts = []
    for b in range(bt):
        lo, hi = b * seq_len, (b + 1) * seq_len
        qb, kb, vb = q_t[:, :, lo:hi], k_t[:, :, lo:hi], v_t[:, :, lo:hi]
        s = jnp.einsum('hdn,hdm->hnm', qb, kb,
                       preferred_element_type=jnp.float32)  # (heads, N, N) f32
        # Numerically stable softmax, statistics in f32.
        s = s - jnp.max(s, axis=-1, keepdims=True)
        p = jnp.exp(s)
        p = p * pl.reciprocal(jnp.sum(p, axis=-1, keepdims=True), approx=True)
        # dropout_rate = 0.0 -> attn_drop / proj_drop are identity (eval).
        ctx_parts.append(
            jnp.einsum('hdm,hnm->hdn', vb, p.astype(jnp.bfloat16),
                       preferred_element_type=jnp.float32))  # (heads, hd, N)
    ctx_t = ctx_parts[0] if bt == 1 else jnp.concatenate(ctx_parts, axis=-1)
    ctx_t = ctx_t.reshape(c, rows).astype(jnp.bfloat16)      # merge heads

    # Single output projection: Wproj(C,C) @ ctx(C,rows) — contraction K = C.
    out_t = jnp.dot(wproj_ref[...], ctx_t,
                    preferred_element_type=jnp.float32) + bproj_ref[...]

    out = out_t.T                                            # (rows, C) f32
    if lane_groups > 1:
        out = _pack_rows_to_lanes(out, lane_groups)          # unmasked vst
    o_ref[...] = out.astype(o_ref.dtype)


def pre_norm_self_attention(x, params, *, num_heads, eps=1e-5, batch_block=None):
    """Fused PreNorm(dim=C, SelfAttention2(num_heads)) on tokens (B, N, C)."""
    B, N, C = x.shape
    assert C % num_heads == 0
    hd = C // num_heads
    scale = hd ** -0.5

    # Batch rows packed per grid step (fills sublanes, amortizes step cost).
    if batch_block is None:
        batch_block = 1
        for bb in range(1, B + 1):
            if B % bb == 0 and bb * N <= 1024:
                batch_block = bb
    Bt = batch_block
    assert B % Bt == 0
    R = Bt * N

    # ---- wrapper-side weight prep (runs once in XLA: free) ----
    # PyTorch Linear weight layout (out_features, in_features) is used as-is
    # (kernel computes W @ x^T); `scale` folded into the q rows/bias.
    wqkv = params['wqkv'].astype(jnp.float32)
    wqkv = jnp.concatenate([wqkv[:C] * scale, wqkv[C:]], axis=0).astype(jnp.bfloat16)
    bqkv = params['bqkv'].astype(jnp.float32)
    bqkv = jnp.concatenate([bqkv[:C] * scale, bqkv[C:]]).reshape(3 * C, 1)
    wproj = params['wproj'].astype(jnp.bfloat16)             # (C, C)
    bproj = params['bproj'].reshape(C, 1).astype(jnp.float32)
    gb = jnp.stack([params['gamma'].reshape(-1),
                    params['beta'].reshape(-1)]).astype(jnp.float32)

    x2 = x.reshape(B * N, C).astype(jnp.float32)

    # Lane-dense output packing (pure row-major repack; values identical).
    g = _lane_groups(C, R)
    out_cols = C * g
    out_rows = (B * N) // g
    blk_rows = R // g

    kernel = functools.partial(_prenorm_attention_kernel,
                               num_heads=num_heads, seq_len=N, eps=eps,
                               lane_groups=g)

    out = pl.pallas_call(
        kernel,
        out_shape=jax.ShapeDtypeStruct((out_rows, out_cols), jnp.float32),
        grid_spec=pltpu.PrefetchScalarGridSpec(
            num_scalar_prefetch=0,
            grid=(B // Bt,),
            in_specs=[
                pl.BlockSpec((R, C), lambda i: (i, 0)),        # x (flattened)
                pl.BlockSpec((2, C), lambda i: (0, 0)),        # gamma/beta
                pl.BlockSpec((3 * C, C), lambda i: (0, 0)),    # Wqkv (fused)
                pl.BlockSpec((3 * C, 1), lambda i: (0, 0)),    # bqkv
                pl.BlockSpec((C, C), lambda i: (0, 0)),        # Wproj
                pl.BlockSpec((C, 1), lambda i: (0, 0)),        # bproj
            ],
            out_specs=pl.BlockSpec((blk_rows, out_cols), lambda i: (i, 0)),
        ),
        compiler_params=pltpu.CompilerParams(
            dimension_semantics=("parallel",),
            # Above v6e's 32 MiB scoped default; within the 40-48 MiB v7x
            # guidance (physical VMEM 64 MiB there).
            vmem_limit_bytes=48 * 1024 * 1024),
    )(x2, gb, wqkv, bqkv, wproj, bproj)

    return out.reshape(B, N, C)


# --------------------------------------------------------------------------
# Pure-JAX references (match the PyTorch forward).
# --------------------------------------------------------------------------
def _layer_norm_ref(x, gamma, beta, eps=1e-5):
    mean = jnp.mean(x, axis=-1, keepdims=True)
    var = jnp.mean((x - mean) ** 2, axis=-1, keepdims=True)
    return (x - mean) / jnp.sqrt(var + eps) * gamma + beta


def _self_attention_ref(x_tok, params, *, num_heads):
    B, N, C = x_tok.shape
    hd = C // num_heads
    scale = hd ** (-0.5)
    qkv = x_tok @ params['wqkv'].T + params['bqkv']            # (B, N, 3C)
    qkv = qkv.reshape(B, N, 3, num_heads, hd)
    qkv = jnp.transpose(qkv, (2, 0, 3, 1, 4))                  # (3, B, h, N, hd)
    q, k, v = qkv[0], qkv[1], qkv[2]
    attn = jax.nn.softmax(jnp.einsum('bhnd,bhmd->bhnm', q, k) * scale, axis=-1)
    ctx = jnp.einsum('bhnm,bhmd->bhnd', attn, v)
    ctx = jnp.transpose(ctx, (0, 2, 1, 3)).reshape(B, N, C)
    return ctx @ params['wproj'].T + params['bproj']


def pre_norm_reference(x, params, *, num_heads, eps=1e-5):
    xn = _layer_norm_ref(x, params['gamma'], params['beta'], eps)
    return _self_attention_ref(xn, params, num_heads=num_heads)


if __name__ == "__main__":
    # Tokens (B, N, C): e.g. H = W = D = 4 -> N = 64 in Transformer1.
    B, N, C = 2, 64, 32
    heads = 8

    key = jax.random.PRNGKey(0)
    k_x, k_g, k_b, k_wqkv, k_bqkv, k_wp, k_bp = jax.random.split(key, 7)

    x = jax.random.normal(k_x, (B, N, C), dtype=jnp.float32)
    params = {
        'gamma': 1.0 + 0.1 * jax.random.normal(k_g, (C,), dtype=jnp.float32),
        'beta': 0.1 * jax.random.normal(k_b, (C,), dtype=jnp.float32),
        'wqkv': 0.05 * jax.random.normal(k_wqkv, (3 * C, C), dtype=jnp.float32),
        'bqkv': 0.05 * jax.random.normal(k_bqkv, (3 * C,), dtype=jnp.float32),
        'wproj': 0.05 * jax.random.normal(k_wp, (C, C), dtype=jnp.float32),
        'bproj': 0.05 * jax.random.normal(k_bp, (C,), dtype=jnp.float32),
    }

    ref = pre_norm_reference(x, params, num_heads=heads)

    # Generic PreNorm path: Pallas LayerNorm kernel + arbitrary fn (f32).
    out_generic = pre_norm(
        x, params['gamma'], params['beta'],
        lambda xn: _self_attention_ref(xn, params, num_heads=heads))
    out_generic = jax.block_until_ready(out_generic)
    assert out_generic.shape == (B, N, C)
    assert jnp.allclose(out_generic, ref, atol=1e-4, rtol=1e-4), \
        "PreNorm (LayerNorm kernel) mismatch vs reference"

    # Fused PreNorm + SelfAttention2 kernel (bf16 MXU / f32 accumulation,
    # approx-reciprocal softmax -> slightly looser tolerance).
    out_fused = pre_norm_self_attention(x, params, num_heads=heads)
    out_fused = jax.block_until_ready(out_fused)
    assert out_fused.shape == (B, N, C)
    assert jnp.allclose(out_fused, ref, atol=2e-2, rtol=2e-2), \
        "fused PreNorm+attention kernel mismatch vs reference"

    print("KERNEL_OK")
</pallas_src>

<mosaic_0001>
module attributes {stable_mosaic.version = 11 : i64} {
  func.func @_layer_norm_kernel(%arg0: i32, %arg1: memref<128x32xf32, #tpu.memory_space<vmem>>, %arg2: memref<2x32xf32, #tpu.memory_space<vmem>>, %arg3: memref<32x128xf32, #tpu.memory_space<vmem>>) attributes {dimension_semantics = [#tpu.dimension_semantics<parallel>], iteration_bounds = array<i64: 1>, scalar_prefetch = 0 : i64, scratch_operands = 0 : i64, tpu.core_type = #tpu.core_type<tc>, window_params = [{transform_indices = @transform_0, window_bounds = array<i64: 128, 32>}, {pipeline_mode = #tpu.pipeline_mode<synchronous>, transform_indices = @transform_1, window_bounds = array<i64: 2, 32>}, {transform_indices = @transform_2, window_bounds = array<i64: 32, 128>}]} {
    %c0 = arith.constant 0 : index
    %c0_0 = arith.constant 0 : index
    %0 = vector.load %arg1[%c0, %c0_0] : memref<128x32xf32, #tpu.memory_space<vmem>>, vector<128x32xf32>
    %cst = arith.constant dense<0.000000e+00> : vector<128xf32>
    %1 = vector.multi_reduction <add>, %0, %cst [1] : vector<128x32xf32> to vector<128xf32>
    %2 = vector.shape_cast %1 : vector<128xf32> to vector<128x1xf32>
    %cst_1 = arith.constant 3.200000e+01 : f32
    %3 = vector.broadcast %cst_1 : f32 to vector<128x1xf32>
    %4 = arith.divf %2, %3 : vector<128x1xf32>
    %5 = vector.broadcast %4 : vector<128x1xf32> to vector<128x32xf32>
    %6 = arith.subf %0, %5 : vector<128x32xf32>
    %7 = arith.mulf %6, %6 : vector<128x32xf32>
    %cst_2 = arith.constant dense<0.000000e+00> : vector<128xf32>
    %8 = vector.multi_reduction <add>, %7, %cst_2 [1] : vector<128x32xf32> to vector<128xf32>
    %9 = vector.shape_cast %8 : vector<128xf32> to vector<128x1xf32>
    %cst_3 = arith.constant 3.200000e+01 : f32
    %10 = vector.broadcast %cst_3 : f32 to vector<128x1xf32>
    %11 = arith.divf %9, %10 : vector<128x1xf32>
    %cst_4 = arith.constant 9.99999974E-6 : f32
    %12 = vector.broadcast %cst_4 : f32 to vector<128x1xf32>
    %13 = arith.addf %11, %12 : vector<128x1xf32>
    %14 = math.rsqrt %13 : vector<128x1xf32>
    %15 = vector.broadcast %14 : vector<128x1xf32> to vector<128x32xf32>
    %16 = arith.mulf %6, %15 : vector<128x32xf32>
    %c0_5 = arith.constant 0 : index
    %c0_6 = arith.constant 0 : index
    %17 = vector.load %arg2[%c0_5, %c0_6] : memref<2x32xf32, #tpu.memory_space<vmem>>, vector<1x32xf32>
    %18 = vector.broadcast %17 : vector<1x32xf32> to vector<128x32xf32>
    %19 = arith.mulf %16, %18 : vector<128x32xf32>
    %c1 = arith.constant 1 : index
    %c0_7 = arith.constant 0 : index
    %20 = vector.load %arg2[%c1, %c0_7] : memref<2x32xf32, #tpu.memory_space<vmem>>, vector<1x32xf32>
    %21 = vector.broadcast %20 : vector<1x32xf32> to vector<128x32xf32>
    %22 = arith.addf %19, %21 : vector<128x32xf32>
    %23 = vector.shape_cast %22 : vector<128x32xf32> to vector<32x4x32xf32>
    %24 = vector.extract_strided_slice %23 {offsets = [0, 0, 0], sizes = [32, 1, 32], strides = [1, 1, 1]} : vector<32x4x32xf32> to vector<32x1x32xf32>
    %25 = vector.shape_cast %24 : vector<32x1x32xf32> to vector<32x32xf32>
    %26 = vector.extract_strided_slice %23 {offsets = [0, 1, 0], sizes = [32, 1, 32], strides = [1, 1, 1]} : vector<32x4x32xf32> to vector<32x1x32xf32>
    %27 = vector.shape_cast %26 : vector<32x1x32xf32> to vector<32x32xf32>
    %28 = vector.extract_strided_slice %23 {offsets = [0, 2, 0], sizes = [32, 1, 32], strides = [1, 1, 1]} : vector<32x4x32xf32> to vector<32x1x32xf32>
    %29 = vector.shape_cast %28 : vector<32x1x32xf32> to vector<32x32xf32>
    %30 = vector.extract_strided_slice %23 {offsets = [0, 3, 0], sizes = [32, 1, 32], strides = [1, 1, 1]} : vector<32x4x32xf32> to vector<32x1x32xf32>
    %31 = vector.shape_cast %30 : vector<32x1x32xf32> to vector<32x32xf32>
    %32 = tpu.concatenate %25, %27, %29, %31 in 1 : vector<32x32xf32>, vector<32x32xf32>, vector<32x32xf32>, vector<32x32xf32> -> vector<32x128xf32>
    %c0_8 = arith.constant 0 : index
    %c0_9 = arith.constant 0 : index
    %33 = vector.load %arg3[%c0_8, %c0_9] : memref<32x128xf32, #tpu.memory_space<vmem>>, vector<32x128xf32>
    tpu.vector_store %arg3[%c0_8, %c0_9], %32 {strides = array<i32>} : memref<32x128xf32, #tpu.memory_space<vmem>>, vector<32x128xf32>,
    return
  }
  func.func @transform_0(%arg0: i32) -> (i32, i32) {
    %c0_i32 = arith.constant 0 : i32
    %c0_i32_0 = arith.constant 0 : i32
    return %arg0, %c0_i32 : i32, i32
  }
  func.func @transform_1(%arg0: i32) -> (i32, i32) {
    %c0_i32 = arith.constant 0 : i32
    %c0_i32_0 = arith.constant 0 : i32
    %c0_i32_1 = arith.constant 0 : i32
    return %c0_i32, %c0_i32_0 : i32, i32
  }
  func.func @transform_2(%arg0: i32) -> (i32, i32) {
    %c0_i32 = arith.constant 0 : i32
    %c0_i32_0 = arith.constant 0 : i32
    return %arg0, %c0_i32 : i32, i32
  }
}

</mosaic_0001>

<bundles_post_ra>
// kernel: tpu_custom_call.1
= control target key start
LH: loop header
LB: loop body
LE: loop exit
PB: predicated region body
PF: predicated region fallthrough
CT: control target
= control target key end

     0   :  { %vm28_vm0 = vcmask 261120   ;;  %s1725_s0 = inlined_call_operand.vmem [shape: f32[128,32], index: 0, kind: input, shape index: {}]   ;;  %s1726_s1 = inlined_call_operand.vmem [shape: f32[2,32], index: 1, kind: input, shape index: {}]   ;;  %s1727_s2 = inlined_call_operand.hbm [shape: f32[32,128], index: 2, kind: output, shape index: {}]  }
   0x1   :  { %v873_v0 = vld [vmem:[%s1725_s0 + $0x40] sm:$0xff]  ;;  %v878_v1 = vld [vmem:[%s1725_s0 + $0x8] sm:$0xff] }
   0x2   :  { %v12_v2 = vld [vmem:[%s1725_s0] sm:$0xff]  ;;  %v53_v3 = vsel %vm28_vm0, %v873_v0, 0.0  ;;  %v32_v4 = vsel %vm28_vm0, %v878_v1, 0.0  ;;  %v896_v7 = vld [vmem:[%s1725_s0 + $0x28] sm:$0xff] }
   0x3   :  { %v29_v5 = vsel %vm28_vm0, %v12_v2, 0.0  ;;  %54 = vadd.xlane.f32.xlu1 %v53_v3  ;;  %33 = vadd.xlane.f32.xlu2 %v32_v4  ;;  %v891_v6 = vld [vmem:[%s1725_s0 + $0x60] sm:$0xff] }
   0x4   :  { %30 = vadd.xlane.f32.xlu0 %v29_v5  ;;  %v901_v8 = vld [vmem:[%s1725_s0 + $0x20] sm:$0xff] }
   0x5   :  { %7 = vsyncpa [#allocation3], 0  ;;  %v65_v9 = vsel %vm28_vm0, %v891_v6, 0.0  ;;  %v44_v10 = vsel %vm28_vm0, %v896_v7, 0.0  ;;  %v41_v11 = vsel %vm28_vm0, %v901_v8, 0.0  ;;  %v912_v12 = vld [vmem:[%s1725_s0 + $0x10] sm:$0xff] }
   0x6   :  { %v917_v13 = vld [vmem:[%s1725_s0 + $0x68] sm:$0xff]  ;;  %v35_v15 = vsel %vm28_vm0, %v912_v12, 0.0  ;;  %v933_v18 = vld [vmem:[%s1725_s0 + $0x70] sm:$0xff]  ;;  %v954_v24 = vld [vmem:[%s1725_s0 + $0x58] sm:$0xff]  ;;  %v848_v32 = vmov 32.0   ;;  %s850_s16 = smov 64  }
   0x7   :  { %v922_v14 = vld [vmem:[%s1725_s0 + $0x48] sm:$0xff]  ;;  %v68_v16 = vsel %vm28_vm0, %v917_v13, 0.0  ;;  %v938_v19 = vld [vmem:[%s1725_s0 + $0x50] sm:$0xff]  ;;  %v71_v21 = vsel %vm28_vm0, %v933_v18, 0.0  ;;  %v959_v25 = vld [vmem:[%s1725_s0 + $0x38] sm:$0xff]  ;;  %v62_v27 = vsel %vm28_vm0, %v954_v24, 0.0  ;;  %788 = vrcp.f32 %v848_v32 }
   0x8   :  { %v56_v17 = vsel %vm28_vm0, %v922_v14, 0.0  ;;  %v943_v20 = vld [vmem:[%s1725_s0 + $0x30] sm:$0xff]  ;;  %v59_v22 = vsel %vm28_vm0, %v938_v19, 0.0  ;;  %v964_v26 = vld [vmem:[%s1725_s0 + $0x18] sm:$0xff]  ;;  %v50_v28 = vsel %vm28_vm0, %v959_v25, 0.0  ;;  %s851_s17 = smov 96  }
   0x9   :  { %v47_v23 = vsel %vm28_vm0, %v943_v20, 0.0  ;;  %v38_v29 = vsel %vm28_vm0, %v964_v26, 0.0  ;;  %v975_v30 = vld [vmem:[%s1725_s0 + $0x78] sm:$0xff]  ;;  %s852_s18 = smov [#allocation2]   ;;  %s767_s22 = sshll.u32 %s1727_s2, 4  ;;  %s768_s22 = int_to_ptr.hbm [resolvable:$true] %s767_s22 }
   0xa   :  { %v74_v31 = vsel %vm28_vm0, %v975_v30, 0.0  ;;  %s765_s19 = sshll.u32 %s852_s18, 4  ;;  %s853_s23 = smov 128   ;;  %s766_s19 = int_to_ptr.vmem [resolvable:$true] %s765_s19 }
   0xb   :  { %66 = vadd.xlane.f32.xlu1 %v65_v9  ;;  %45 = vadd.xlane.f32.xlu2 %v44_v10  ;;  %s854_s24 = smov 8  }
   0xc   :  { %42 = vadd.xlane.f32.xlu0 %v41_v11 }
   0xd   :  { %v789_v33 = vpop.eup %788 }
   0xe   :  { %v78_v34 = vmul.f32 32.0, %v789_v33  ;;  %vm82_vm1 = vweird.f32 %v789_v33 }
  0x10   :  { %v79_v35 = vsub.f32 1.0, %v78_v34 }
  0x12   :  { %v80_v36 = vmul.f32 %v789_v33, %v79_v35 }
  0x13   :  { %36 = vadd.xlane.f32.xlu2 %v35_v15  ;;  %69 = vadd.xlane.f32.xlu1 %v68_v16 }
  0x14   :  { %57 = vadd.xlane.f32.xlu0 %v56_v17  ;;  %v81_v37 = vadd.f32 %v789_v33, %v80_v36 }
  0x16   :  { %v979_v38 = vsel %vm82_vm1, %v789_v33, %v81_v37 }
  0x1b   :  { %72 = vadd.xlane.f32.xlu2 %v71_v21  ;;  %60 = vadd.xlane.f32.xlu1 %v59_v22 }
  0x1c   :  { %48 = vadd.xlane.f32.xlu0 %v47_v23 }
  0x23   :  { %63 = vadd.xlane.f32.xlu2 %v62_v27  ;;  %51 = vadd.xlane.f32.xlu1 %v50_v28 }
  0x24   :  { %39 = vadd.xlane.f32.xlu0 %v38_v29 }
  0x2c   :  { %75 = vadd.xlane.f32.xlu0 %v74_v31 }
  0x76   :  { %v55_v39 = vpop.xlane.xlu1 %54  ;;  %v34_v40 = vpop.xlane.xlu2 %33 }
  0x77   :  { %v92_v41 = vmul.f32 %v979_v38, %v55_v39  ;;  %v31_v42 = vpop.xlane.xlu0 %30  ;;  %v85_v55 = vmul.f32 %v979_v38, %v34_v40 }
  0x78   :  { %v84_v43 = vmul.f32 %v979_v38, %v31_v42 }
  0x79   :  { %v984_v44 = vsub.f32 %v873_v0, %v92_v41  ;;  %v1012_v62 = vsub.f32 %v878_v1, %v85_v55 }
  0x7a   :  { %v986_v45 = vsub.f32 %v12_v2, %v84_v43 }
  0x7b   :  { %v124_v46 = vmul.f32 %v984_v44, %v984_v44  ;;  %v117_v9 = vmul.f32 %v1012_v62, %v1012_v62 }
  0x7c   :  { %v116_v47 = vmul.f32 %v986_v45, %v986_v45 }
  0x7d   :  { %v156_v48 = vsel %vm28_vm0, %v124_v46, 0.0  ;;  %v135_v17 = vsel %vm28_vm0, %v117_v9, 0.0 }
  0x7e   :  { %v67_v49 = vpop.xlane.xlu1 %66  ;;  %v46_v50 = vpop.xlane.xlu2 %45  ;;  %157 = vadd.xlane.f32.xlu0 %v156_v48  ;;  %v132_v51 = vsel %vm28_vm0, %v116_v47, 0.0 }
  0x7f   :  { %v96_v52 = vmul.f32 %v979_v38, %v67_v49  ;;  %v89_v53 = vmul.f32 %v979_v38, %v46_v50  ;;  %133 = vadd.xlane.f32.xlu1 %v132_v51  ;;  %v43_v54 = vpop.xlane.xlu0 %42 }
  0x80   :  { %v88_v56 = vmul.f32 %v979_v38, %v43_v54 }
  0x81   :  { %v999_v57 = vsub.f32 %v891_v6, %v96_v52  ;;  %v1002_v58 = vsub.f32 %v896_v7, %v89_v53 }
  0x82   :  { %v1005_v59 = vsub.f32 %v901_v8, %v88_v56 }
  0x83   :  { %v121_v60 = vmul.f32 %v1002_v58, %v1002_v58  ;;  %v128_v61 = vmul.f32 %v999_v57, %v999_v57 }
  0x84   :  { %v120_v63 = vmul.f32 %v1005_v59, %v1005_v59 }
  0x85   :  { %v147_v0 = vsel %vm28_vm0, %v121_v60, 0.0  ;;  %v168_v2 = vsel %vm28_vm0, %v128_v61, 0.0 }
  0x86   :  { %v37_v3 = vpop.xlane.xlu2 %36  ;;  %148 = vadd.xlane.f32.xlu0 %v147_v0  ;;  %v144_v4 = vsel %vm28_vm0, %v120_v63, 0.0  ;;  %v70_v5 = vpop.xlane.xlu1 %69 }
  0x87   :  { %v86_v6 = vmul.f32 %v979_v38, %v37_v3  ;;  %169 = vadd.xlane.f32.xlu1 %v168_v2  ;;  %145 = vadd.xlane.f32.xlu2 %v144_v4  ;;  %v58_v7 = vpop.xlane.xlu0 %57  ;;  %v97_v8 = vmul.f32 %v979_v38, %v70_v5 }
  0x88   :  { %v93_v1 = vmul.f32 %v979_v38, %v58_v7 }
  0x89   :  { %v1025_v10 = vsub.f32 %v912_v12, %v86_v6  ;;  %v1033_v16 = vsub.f32 %v917_v13, %v97_v8 }
  0x8a   :  { %v1028_v11 = vsub.f32 %v922_v14, %v93_v1 }
  0x8b   :  { %v118_v15 = vmul.f32 %v1025_v10, %v1025_v10  ;;  %v129_v31 = vmul.f32 %v1033_v16, %v1033_v16 }
  0x8c   :  { %v125_v21 = vmul.f32 %v1028_v11, %v1028_v11 }
  0x8d   :  { %v138_v22 = vsel %vm28_vm0, %v118_v15, 0.0  ;;  %v171_v36 = vsel %vm28_vm0, %v129_v31, 0.0 }
  0x8e   :  { %v73_v23 = vpop.xlane.xlu2 %72  ;;  %139 = vadd.xlane.f32.xlu0 %v138_v22  ;;  %v159_v12 = vsel %vm28_vm0, %v125_v21, 0.0  ;;  %v61_v27 = vpop.xlane.xlu1 %60 }
  0x8f   :  { %v98_v14 = vmul.f32 %v979_v38, %v73_v23  ;;  %136 = vadd.xlane.f32.xlu2 %v135_v17  ;;  %160 = vadd.xlane.f32.xlu1 %v159_v12  ;;  %v49_v28 = vpop.xlane.xlu0 %48  ;;  %v94_v29 = vmul.f32 %v979_v38, %v61_v27 }
  0x90   :  { %v90_v13 = vmul.f32 %v979_v38, %v49_v28 }
  0x91   :  { %v1046_v32 = vsub.f32 %v933_v18, %v98_v14  ;;  %v1054_v35 = vsub.f32 %v938_v19, %v94_v29 }
  0x92   :  { %v1049_v33 = vsub.f32 %v943_v20, %v90_v13 }
  0x93   :  { %v130_v34 = vmul.f32 %v1046_v32, %v1046_v32  ;;  %v126_v46 = vmul.f32 %v1054_v35, %v1054_v35 }
  0x94   :  { %v122_v37 = vmul.f32 %v1049_v33, %v1049_v33 }
  0x95   :  { %v174_v39 = vsel %vm28_vm0, %v130_v34, 0.0  ;;  %v162_v51 = vsel %vm28_vm0, %v126_v46, 0.0 }
  0x96   :  { %v64_v40 = vpop.xlane.xlu2 %63  ;;  %175 = vadd.xlane.f32.xlu0 %v174_v39  ;;  %v150_v18 = vsel %vm28_vm0, %v122_v37, 0.0  ;;  %v52_v41 = vpop.xlane.xlu1 %51 }
  0x97   :  { %v95_v20 = vmul.f32 %v979_v38, %v64_v40  ;;  %172 = vadd.xlane.f32.xlu2 %v171_v36  ;;  %151 = vadd.xlane.f32.xlu1 %v150_v18  ;;  %v40_v42 = vpop.xlane.xlu0 %39  ;;  %v91_v43 = vmul.f32 %v979_v38, %v52_v41 }
  0x98   :  { %v87_v19 = vmul.f32 %v979_v38, %v40_v42 }
  0x99   :  { %v1067_v47 = vsub.f32 %v954_v24, %v95_v20  ;;  %v1075_v50 = vsub.f32 %v959_v25, %v91_v43 }
  0x9a   :  { %v1070_v48 = vsub.f32 %v964_v26, %v87_v19 }
  0x9b   :  { %v127_v49 = vmul.f32 %v1067_v47, %v1067_v47  ;;  %v123_v55 = vmul.f32 %v1075_v50, %v1075_v50 }
  0x9c   :  { %v119_v52 = vmul.f32 %v1070_v48, %v1070_v48 }
  0x9d   :  { %v165_v53 = vsel %vm28_vm0, %v127_v49, 0.0  ;;  %v153_v56 = vsel %vm28_vm0, %v123_v55, 0.0 }
  0x9e   :  { %166 = vadd.xlane.f32.xlu0 %v165_v53  ;;  %v141_v24 = vsel %vm28_vm0, %v119_v52, 0.0 }
  0x9f   :  { %163 = vadd.xlane.f32.xlu2 %v162_v51  ;;  %142 = vadd.xlane.f32.xlu1 %v141_v24  ;;  %v76_v26 = vpop.xlane.xlu0 %75  ;;  %v1123_v24 = vld [vmem:[%s1726_s1] ss:$0 sm:$0xff] }
  0xa0   :  { %v99_v54 = vmul.f32 %v979_v38, %v76_v26 }
  0xa2   :  { %v1086_v25 = vsub.f32 %v975_v30, %v99_v54 }
  0xa4   :  { %v131_v60 = vmul.f32 %v1086_v25, %v1086_v25 }
  0xa6   :  { %v177_v61 = vsel %vm28_vm0, %v131_v60, 0.0 }
  0xa7   :  { %154 = vadd.xlane.f32.xlu2 %v153_v56  ;;  %178 = vadd.xlane.f32.xlu1 %v177_v61 }
  0xf1   :  { %v158_v63 = vpop.xlane.xlu0 %157 }
  0xf2   :  { %v134_v0 = vpop.xlane.xlu1 %133  ;;  %v188_v2 = vmul.f32 %v158_v63, %v979_v38 }
  0xf3   :  { %v180_v3 = vmul.f32 %v134_v0, %v979_v38 }
  0xf4   :  { %v204_v4 = vadd.f32 1e-05, %v188_v2 }
  0xf5   :  { %v196_v5 = vadd.f32 1e-05, %v180_v3 }
  0xf6   :  { %790 = vrsqrt.f32 %v204_v4  ;;  %vm298_vm2 = vweird.f32 %v204_v4 }
  0xf7   :  { %792 = vrsqrt.f32 %v196_v5  ;;  %vm218_vm5 = vweird.f32 %v196_v5 }
  0xf9   :  { %v149_v30 = vpop.xlane.xlu0 %148 }
  0xfa   :  { %v170_v6 = vpop.xlane.xlu1 %169  ;;  %v146_v7 = vpop.xlane.xlu2 %145  ;;  %v185_v1 = vmul.f32 %v149_v30, %v979_v38  ;;  %v1138_v30 = vld [vmem:[%s1726_s1 + $0x1] ss:$0 sm:$0xff]  ;;  %s849_s1 = smov 32  }
  0xfb   :  { %v192_v8 = vmul.f32 %v170_v6, %v979_v38  ;;  %v184_v9 = vmul.f32 %v146_v7, %v979_v38 }
  0xfc   :  { %v791_v15 = vpop.eup %790  ;;  %v1097_v17 = vadd.f32 1e-05, %v185_v1 }
  0xfd   :  { %v793_v21 = vpop.eup %792  ;;  %v293_v22 = vmul.f32 %v791_v15, %v204_v4  ;;  %v1099_v23 = vadd.f32 1e-05, %v192_v8  ;;  %v1101_v12 = vadd.f32 1e-05, %v184_v9  ;;  %vm299_vm3 = vweird.f32 %v791_v15 }
  0xfe   :  { %v213_v27 = vmul.f32 %v793_v21, %v196_v5  ;;  %794 = vrsqrt.f32 %v1097_v17  ;;  %vm219_vm4 = vweird.f32 %v793_v21  ;;  %vm300_vm6 = vmor %vm298_vm2, %vm299_vm3  ;;  %vm268_vm8 = vweird.f32 %v1097_v17 }
  0xff   :  { %v294_v14 = vmul.f32 %v791_v15, %v293_v22  ;;  %796 = vrsqrt.f32 %v1099_v23  ;;  %vm220_vm7 = vmor %vm218_vm5, %vm219_vm4  ;;  %vm338_vm10 = vweird.f32 %v1099_v23  ;;  %vm258_vm12 = vweird.f32 %v1101_v12 }
 0x100   :  { %v214_v28 = vmul.f32 %v793_v21, %v213_v27  ;;  %798 = vrsqrt.f32 %v1101_v12 }
 0x101   :  { %v295_v13 = vmul.f32 0.5, %v294_v14  ;;  %v140_v29 = vpop.xlane.xlu0 %139 }
 0x102   :  { %v215_v31 = vmul.f32 0.5, %v214_v28  ;;  %v137_v34 = vpop.xlane.xlu2 %136  ;;  %v161_v36 = vpop.xlane.xlu1 %160  ;;  %v182_v18 = vmul.f32 %v140_v29, %v979_v38 }
 0x103   :  { %v296_v37 = vsub.f32 1.5, %v295_v13  ;;  %v181_v39 = vmul.f32 %v137_v34, %v979_v38  ;;  %v189_v40 = vmul.f32 %v161_v36, %v979_v38 }
 0x104   :  { %v1109_v41 = vpop.eup %794  ;;  %v216_v20 = vsub.f32 1.5, %v215_v31  ;;  %v1127_v56 = vadd.f32 1e-05, %v182_v18 }
 0x105   :  { %v797_v42 = vpop.eup %796  ;;  %v297_v19 = vmul.f32 %v791_v15, %v296_v37  ;;  %v263_v43 = vmul.f32 %v1109_v41, %v1097_v17  ;;  %v1113_v46 = vadd.f32 1e-05, %v181_v39  ;;  %v1118_v53 = vadd.f32 1e-05, %v189_v40 }
 0x106   :  { %v799_v49 = vpop.eup %798  ;;  %v217_v51 = vmul.f32 %v793_v21, %v216_v20  ;;  %v333_v52 = vmul.f32 %v797_v42, %v1099_v23  ;;  %vm269_vm9 = vweird.f32 %v1109_v41  ;;  %vm339_vm11 = vweird.f32 %v797_v42 }
 0x107   :  { %v301_v26 = vsel %vm300_vm6, %v791_v15, %v297_v19  ;;  %v253_v54 = vmul.f32 %v799_v49, %v1101_v12  ;;  %v264_v55 = vmul.f32 %v1109_v41, %v263_v43  ;;  %800 = vrsqrt.f32 %v1113_v46  ;;  %vm1150_vm14 = vmor %vm268_vm8, %vm269_vm9 }
 0x108   :  { %v221_v60 = vsel %vm220_vm7, %v793_v21, %v217_v51  ;;  %v380_v61 = vmul.f32 %v301_v26, %v984_v44  ;;  %v334_v63 = vmul.f32 %v797_v42, %v333_v52  ;;  %802 = vrsqrt.f32 %v1118_v53  ;;  %vm340_vm2 = vmor %vm338_vm10, %vm339_vm11 }
 0x109   :  { %v254_v0 = vmul.f32 %v799_v49, %v253_v54  ;;  %v265_v2 = vmul.f32 0.5, %v264_v55  ;;  %v372_v3 = vmul.f32 %v221_v60, %v986_v45  ;;  %804 = vrsqrt.f32 %v1127_v56  ;;  %v176_v31 = vpop.xlane.xlu0 %175 }
 0x10a   :  { %v335_v4 = vmul.f32 0.5, %v334_v63  ;;  %v173_v5 = vpop.xlane.xlu2 %172  ;;  %v398_v44 = vmul.f32 %v1123_v24, %v380_v61  ;;  %v152_v8 = vpop.xlane.xlu1 %151  ;;  %vm259_vm13 = vweird.f32 %v799_v49  ;;  %vm228_vm15 = vweird.f32 %v1113_v46 }
 0x10b   :  { %v255_v6 = vmul.f32 0.5, %v254_v0  ;;  %v266_v7 = vsub.f32 1.5, %v265_v2  ;;  %v193_v45 = vmul.f32 %v173_v5, %v979_v38  ;;  %vm308_vm1 = vweird.f32 %v1118_v53  ;;  %vm260_vm3 = vmor %vm258_vm12, %vm259_vm13 }
 0x10c   :  { %v336_v1 = vsub.f32 1.5, %v335_v4  ;;  %v390_v28 = vmul.f32 %v1123_v24, %v372_v3  ;;  %v1162_v13 = vadd.f32 %v1138_v30, %v398_v44  ;;  %v186_v23 = vmul.f32 %v152_v8, %v979_v38 }
 0x10d   :  { %v256_v9 = vsub.f32 1.5, %v255_v6  ;;  %v267_v15 = vmul.f32 %v1109_v41, %v266_v7  ;;  %v1154_v22 = vpop.eup %800  ;;  %v1158_v14 = vadd.f32 1e-05, %v193_v45  ;;  %vm238_vm4 = vweird.f32 %v1127_v56 }
 0x10e   :  { %v337_v27 = vmul.f32 %v797_v42, %v336_v1  ;;  %v223_v29 = vmul.f32 %v1154_v22, %v1113_v46  ;;  %v803_v34 = vpop.eup %802  ;;  %v1185_v43 = vadd.f32 %v1138_v30, %v390_v28  ;;  %v1188_v51 = vrot.slane %v1162_v13, 4 }
 0x10f   :  { %v257_v17 = vmul.f32 %v799_v49, %v256_v9  ;;  %v271_v37 = vsel %vm1150_vm14, %v1109_v41, %v267_v15  ;;  %806 = vrsqrt.f32 %v1158_v14  ;;  %v805_v39 = vpop.eup %804  ;;  %v194_v41 = vmul.f32 %v176_v31, %v979_v38 }
 0x110   :  { %v341_v36 = vsel %vm340_vm2, %v797_v42, %v337_v27  ;;  %v224_v20 = vmul.f32 %v1154_v22, %v223_v29  ;;  %v303_v42 = vmul.f32 %v803_v34, %v1118_v53  ;;  %v233_v12 = vmul.f32 %v805_v39, %v1127_v56 }
 0x111   :  { %v384_v40 = vmul.f32 %v341_v36, %v999_v57  ;;  %v261_v18 = vsel %vm260_vm3, %v799_v49, %v257_v17  ;;  %v377_v52 = vmul.f32 %v271_v37, %v1002_v58  ;;  %vm229_vm5 = vweird.f32 %v1154_v22  ;;  %v167_v28 = vpop.xlane.xlu0 %166 }
 0x112   :  { %v376_v19 = vmul.f32 %v261_v18, %v1005_v59  ;;  %v225_v57 = vmul.f32 0.5, %v224_v20  ;;  %v304_v49 = vmul.f32 %v803_v34, %v303_v42  ;;  %vm309_vm6 = vweird.f32 %v803_v34  ;;  %v164_v26 = vpop.xlane.xlu2 %163  ;;  %v143_v4 = vpop.xlane.xlu1 %142  ;;  %vm1203_vm8 = vmor %vm228_vm15, %vm229_vm5 }
 0x113   :  { %v234_v59 = vmul.f32 %v805_v39, %v233_v12  ;;  %v402_v54 = vmul.f32 %v1123_v24, %v384_v40  ;;  %v1193_v61 = vadd.f32 1e-05, %v186_v23  ;;  %vm239_vm7 = vweird.f32 %v805_v39  ;;  %vm1216_vm9 = vmor %vm308_vm1, %vm309_vm6 }
 0x114   :  { %v226_v55 = vsub.f32 1.5, %v225_v57  ;;  %v305_v60 = vmul.f32 0.5, %v304_v49  ;;  %v394_v0 = vmul.f32 %v1123_v24, %v376_v19  ;;  %v1196_v3 = vadd.f32 1e-05, %v194_v41  ;;  %vm1230_vm10 = vmor %vm238_vm4, %vm239_vm7 }
 0x115   :  { %v807_v63 = vpop.eup %806  ;;  %v235_v2 = vmul.f32 0.5, %v234_v59  ;;  %v190_v7 = vmul.f32 %v164_v26, %v979_v38  ;;  %v1210_v1 = vrot.slane %v1185_v43, 4  ;;  %v395_v45 = vmul.f32 %v1123_v24, %v377_v52 }
 0x116   :  { %v227_v58 = vmul.f32 %v1154_v22, %v226_v55  ;;  %v306_v44 = vsub.f32 1.5, %v305_v60  ;;  %v343_v6 = vmul.f32 %v807_v63, %v1158_v14  ;;  %808 = vrsqrt.f32 %v1193_v61 }
 0x117   :  { %v236_v46 = vsub.f32 1.5, %v235_v2  ;;  %v1222_v9 = vadd.f32 %v1138_v30, %v402_v54  ;;  %v1235_v17 = vadd.f32 %v1138_v30, %v394_v0  ;;  %810 = vrsqrt.f32 %v1196_v3 }
 0x118   :  { %v231_v15 = vsel %vm1203_vm8, %v1154_v22, %v227_v58  ;;  %v307_v21 = vmul.f32 %v803_v34, %v306_v44  ;;  %v344_v27 = vmul.f32 %v807_v63, %v343_v6  ;;  %v1241_v37 = vadd.f32 1e-05, %v190_v7 }
 0x119   :  { %v373_v29 = vmul.f32 %v231_v15, %v1012_v62  ;;  %v237_v31 = vmul.f32 %v805_v39, %v236_v46  ;;  %v183_v56 = vmul.f32 %v143_v4, %v979_v38  ;;  %v1245_v23 = vadd.f32 %v1138_v30, %v395_v45 }
 0x11a   :  { %v311_v22 = vsel %vm1216_vm9, %v803_v34, %v307_v21  ;;  %v345_v36 = vmul.f32 0.5, %v344_v27  ;;  %v191_v62 = vmul.f32 %v167_v28, %v979_v38  ;;  %vm349_vm11 = vweird.f32 %v807_v63  ;;  %v155_v52 = vpop.xlane.xlu2 %154 }
 0x11b   :  { %v381_v40 = vmul.f32 %v311_v22, %v1028_v11  ;;  %v241_v18 = vsel %vm1230_vm10, %v805_v39, %v237_v31  ;;  %v391_v20 = vmul.f32 %v1123_v24, %v373_v29  ;;  %812 = vrsqrt.f32 %v1241_v37 }
 0x11c   :  { %v346_v42 = vsub.f32 1.5, %v345_v36  ;;  %v809_v34 = vpop.eup %808  ;;  %v374_v19 = vmul.f32 %v241_v18, %v1025_v10  ;;  %vm348_vm12 = vweird.f32 %v1158_v14  ;;  %v1255_v12 = vadd.f32 1e-05, %v183_v56  ;;  %v179_v10 = vpop.xlane.xlu1 %178 }
 0x11d   :  { %v1257_v41 = vadd.f32 1e-05, %v191_v62  ;;  %v1260_v11 = vrot.slane %v1222_v9, 4  ;;  %v1263_v39 = vrot.slane %v1235_v17, 4  ;;  %v273_v49 = vmul.f32 %v809_v34, %v1193_v61  ;;  %v811_v59 = vpop.eup %810  ;;  %vm350_vm13 = vmor %vm348_vm12, %vm349_vm11 }
 0x11e   :  { %v347_v57 = vmul.f32 %v807_v63, %v346_v42  ;;  %v399_v26 = vmul.f32 %v1123_v24, %v381_v40  ;;  %vm278_vm14 = vweird.f32 %v1193_v61  ;;  %vm358_vm15 = vweird.f32 %v1196_v3 }
 0x11f   :  { %814 = vrsqrt.f32 %v1255_v12  ;;  %v1271_v14 = vadd.f32 %v1138_v30, %v391_v20  ;;  %v274_v55 = vmul.f32 %v809_v34, %v273_v49  ;;  %v353_v60 = vmul.f32 %v811_v59, %v1196_v3 }
 0x120   :  { %v351_v54 = vsel %vm350_vm13, %v807_v63, %v347_v57  ;;  %v392_v0 = vmul.f32 %v1123_v24, %v374_v19  ;;  %816 = vrsqrt.f32 %v1257_v41  ;;  %v187_v4 = vmul.f32 %v155_v52, %v979_v38 }
 0x121   :  { %v385_v2 = vmul.f32 %v351_v54, %v1033_v16  ;;  %v1278_v58 = vpop.eup %812  ;;  %v275_v5 = vmul.f32 0.5, %v274_v55  ;;  %vm279_vm1 = vweird.f32 %v809_v34  ;;  %v354_v44 = vmul.f32 %v811_v59, %v353_v60 }
 0x122   :  { %v195_v6 = vmul.f32 %v179_v10, %v979_v38  ;;  %v1282_v63 = vadd.f32 %v1138_v30, %v399_v26  ;;  %v313_v7 = vmul.f32 %v1278_v58, %v1241_v37  ;;  %vm318_vm2 = vweird.f32 %v1241_v37  ;;  %vm1301_vm5 = vmor %vm278_vm14, %vm279_vm1 }
 0x123   :  { %vm248_vm3 = vweird.f32 %v1255_v12  ;;  %v1288_v16 = vadd.f32 1e-05, %v187_v4  ;;  %v276_v45 = vsub.f32 1.5, %v275_v5  ;;  %v355_v8 = vmul.f32 0.5, %v354_v44 }
 0x124   :  { %vm359_vm4 = vweird.f32 %v811_v59  ;;  %v1290_v46 = vadd.f32 1e-05, %v195_v6  ;;  %v1295_v38 = vadd.f32 %v1138_v30, %v392_v0  ;;  %v403_v21 = vmul.f32 %v1123_v24, %v385_v2 }
 0x125   :  { %v1292_v15 = vpop.eup %814  ;;  %v314_v27 = vmul.f32 %v1278_v58, %v313_v7  ;;  %818 = vrsqrt.f32 %v1288_v16  ;;  %v277_v28 = vmul.f32 %v809_v34, %v276_v45  ;;  %v356_v29 = vsub.f32 1.5, %v355_v8  ;;  %vm1314_vm7 = vmor %vm358_vm15, %vm359_vm4 }
 0x126   :  { %v243_v31 = vmul.f32 %v1292_v15, %v1255_v12  ;;  %vm328_vm6 = vweird.f32 %v1257_v41  ;;  %v1310_v22 = vpop.eup %816  ;;  %vm319_vm8 = vweird.f32 %v1278_v58  ;;  %820 = vrsqrt.f32 %v1290_v46 }
 0x127   :  { %v315_v36 = vmul.f32 0.5, %v314_v27  ;;  %v1321_v56 = vrot.slane %v1271_v14, 4  ;;  %v281_v40 = vsel %vm1301_vm5, %v809_v34, %v277_v28  ;;  %v357_v18 = vmul.f32 %v811_v59, %v356_v29  ;;  %vm320_vm12 = vmor %vm318_vm2, %vm319_vm8 }
 0x128   :  { %v244_v62 = vmul.f32 %v1292_v15, %v243_v31  ;;  %v323_v3 = vmul.f32 %v1310_v22, %v1257_v41  ;;  %v1329_v20 = vadd.f32 %v1138_v30, %v403_v21  ;;  %v378_v42 = vmul.f32 %v281_v40, %v1049_v33 }
 0x129   :  { %v316_v19 = vsub.f32 1.5, %v315_v36  ;;  %v1333_v57 = vrot.slane %v1295_v38, 4  ;;  %vm488_vm9 = vcmask 1041409   ;;  %v361_v49 = vsel %vm1314_vm7, %v811_v59, %v357_v18 }
 0x12a   :  { %v245_v34 = vmul.f32 0.5, %v244_v62  ;;  %vm249_vm10 = vweird.f32 %v1292_v15  ;;  %v324_v52 = vmul.f32 %v1310_v22, %v323_v3  ;;  %v396_v10 = vmul.f32 %v1123_v24, %v378_v42 }
 0x12b   :  { %v1339_v26 = vpop.eup %818  ;;  %v386_v54 = vmul.f32 %v361_v49, %v1046_v32  ;;  %v317_v33 = vmul.f32 %v1278_v58, %v316_v19  ;;  %vm368_vm11 = vweird.f32 %v1290_v46  ;;  %vm329_vm13 = vweird.f32 %v1310_v22  ;;  %vm1362_vm1 = vmor %vm248_vm3, %vm249_vm10 }
 0x12c   :  { %v246_v59 = vsub.f32 1.5, %v245_v34  ;;  %v325_v55 = vmul.f32 0.5, %v324_v52  ;;  %v283_v60 = vmul.f32 %v1339_v26, %v1288_v16  ;;  %vm288_vm14 = vweird.f32 %v1288_v16  ;;  %v821_v32 = vpop.eup %820  ;;  %vm1377_vm3 = vmor %vm328_vm6, %vm329_vm13 }
 0x12d   :  { %vm490_vm15 = vcmask 1042434   ;;  %v1354_v0 = vadd.f32 %v1138_v30, %v396_v10  ;;  %v404_v2 = vmul.f32 %v1123_v24, %v386_v54  ;;  %v321_v4 = vsel %vm320_vm12, %v1278_v58, %v317_v33 }
 0x12e   :  { %vm289_vm2 = vweird.f32 %v1339_v26  ;;  %vm492_vm4 = vcmask 1043459   ;;  %vm494_vm5 = vcmask 1044484   ;;  %v382_v5 = vmul.f32 %v321_v4, %v1054_v35 }
 0x12f   :  { %v247_v44 = vmul.f32 %v1292_v15, %v246_v59  ;;  %v326_v6 = vsub.f32 1.5, %v325_v55  ;;  %v284_v7 = vmul.f32 %v1339_v26, %v283_v60  ;;  %vm496_vm7 = vcmask 1045509   ;;  %vm290_vm6 = vmor %vm288_vm14, %vm289_vm2 }
 0x130   :  { %v1371_v58 = vadd.f32 %v1138_v30, %v404_v2  ;;  %v363_v45 = vmul.f32 %v821_v32, %v1290_v46  ;;  %vm369_vm8 = vweird.f32 %v821_v32  ;;  %vm498_vm10 = vcmask 1046534  }
 0x131   :  { %v400_v35 = vmul.f32 %v1123_v24, %v382_v5  ;;  %v251_v8 = vsel %vm1362_vm1, %v1292_v15, %v247_v44  ;;  %v327_v21 = vmul.f32 %v1310_v22, %v326_v6  ;;  %v285_v53 = vmul.f32 0.5, %v284_v7  ;;  %vm1417_vm13 = vmor %vm368_vm11, %vm369_vm8 }
 0x132   :  { %vm500_vm12 = vcmask 1047559   ;;  %v375_v41 = vmul.f32 %v251_v8, %v1070_v48  ;;  %v364_v27 = vmul.f32 %v821_v32, %v363_v45  ;;  %v527_v28 = vperm.slane %v1185_v43, 1 }
 0x133   :  { %v528_v29 = vperm.slane %v1210_v1, 1  ;;  %v1391_v31 = vadd.f32 %v1138_v30, %v400_v35  ;;  %v331_v61 = vsel %vm1377_vm3, %v1310_v22, %v327_v21  ;;  %v286_v36 = vsub.f32 1.5, %v285_v53 }
 0x134   :  { %v529_v15 = vperm.slane %v1271_v14, 1  ;;  %v393_v40 = vmul.f32 %v1123_v24, %v375_v41  ;;  %v383_v18 = vmul.f32 %v331_v61, %v1067_v47  ;;  %v365_v48 = vmul.f32 0.5, %v364_v27 }
 0x135   :  { %v530_v62 = vperm.slane %v1321_v56, 1  ;;  %v287_v3 = vmul.f32 %v1339_v26, %v286_v36  ;;  %v531_v42 = vperm.slane %v1295_v38, 1  ;;  %v532_v19 = vperm.slane %v1333_v57, 1 }
 0x136   :  { %v559_v49 = vsel %vm488_vm9, %v528_v29, %v527_v28  ;;  %v1405_v22 = vadd.f32 %v1138_v30, %v393_v40  ;;  %v401_v34 = vmul.f32 %v1123_v24, %v383_v18  ;;  %v366_v47 = vsub.f32 1.5, %v365_v48 }
 0x137   :  { %v560_v52 = vsel %vm490_vm15, %v529_v15, %v559_v49  ;;  %v291_v10 = vsel %vm290_vm6, %v1339_v26, %v287_v3  ;;  %v1423_v59 = vrot.slane %v1282_v63, 4  ;;  %v1426_v16 = vrot.slane %v1391_v31, 4 }
 0x138   :  { %v561_v33 = vsel %vm492_vm4, %v530_v62, %v560_v52  ;;  %v1429_v55 = vadd.f32 %v1138_v30, %v401_v34  ;;  %v379_v26 = vmul.f32 %v291_v10, %v1075_v50  ;;  %v367_v60 = vmul.f32 %v821_v32, %v366_v47 }
 0x139   :  { %v1433_v46 = vrot.slane %v1405_v22, 4  ;;  %v533_v2 = vperm.slane %v1405_v22, 1  ;;  %v562_v4 = vsel %vm494_vm5, %v531_v42, %v561_v33  ;;  %v543_v37 = vperm.slane %v1162_v13, 1 }
 0x13a   :  { %v544_v5 = vperm.slane %v1188_v51, 1  ;;  %v397_v44 = vmul.f32 %v1123_v24, %v379_v26  ;;  %v371_v6 = vsel %vm1417_vm13, %v821_v32, %v367_v60  ;;  %v563_v50 = vsel %vm496_vm7, %v532_v19, %v562_v4 }
 0x13b   :  { %v534_v7 = vperm.slane %v1433_v46, 1  ;;  %v387_v12 = vmul.f32 %v371_v6, %v1086_v25  ;;  %v564_v45 = vsel %vm498_vm10, %v533_v2, %v563_v50  ;;  %v1447_v35 = vrot.slane %v1429_v55, 4 }
 0x13c   :  { %v545_v8 = vperm.slane %v1282_v63, 1  ;;  %v1451_v21 = vadd.f32 %v1138_v30, %v397_v44  ;;  %v546_v32 = vperm.slane %v1423_v59, 1  ;;  %v547_v41 = vperm.slane %v1391_v31, 1 }
 0x13d   :  { %v565_v53 = vsel %vm500_vm12, %v534_v7, %v564_v45  ;;  %v405_v27 = vmul.f32 %v1123_v24, %v387_v12  ;;  %v548_v25 = vperm.slane %v1426_v16, 1  ;;  %v549_v28 = vperm.slane %v1429_v55, 1 }
 0x13e   :  { %587 = vrot.lane.b32.xlu2 %v565_v53, %s849_s1  ;;  %v550_v29 = vperm.slane %v1447_v35, 1  ;;  %v573_v61 = vsel %vm488_vm9, %v544_v5, %v543_v37  ;;  %v1463_v36 = vrot.slane %v1245_v23, 4  ;;  %v1466_v15 = vrot.slane %v1354_v0, 4 }
 0x13f   :  { %v1469_v40 = vrot.slane %v1451_v21, 4  ;;  %v1472_v24 = vadd.f32 %v1138_v30, %v405_v27  ;;  %v574_v18 = vsel %vm490_vm15, %v545_v8, %v573_v61  ;;  %v535_v48 = vperm.slane %v1235_v17, 1 }
 0x140   :  { %v536_v62 = vperm.slane %v1263_v39, 1  ;;  %v575_v3 = vsel %vm492_vm4, %v546_v32, %v574_v18  ;;  %v537_v42 = vperm.slane %v1245_v23, 1  ;;  %v538_v19 = vperm.slane %v1463_v36, 1 }
 0x141   :  { %v539_v49 = vperm.slane %v1354_v0, 1  ;;  %v576_v34 = vsel %vm494_vm5, %v547_v41, %v575_v3  ;;  %v540_v47 = vperm.slane %v1466_v15, 1  ;;  %v541_v30 = vperm.slane %v1451_v21, 1 }
 0x142   :  { %v542_v52 = vperm.slane %v1469_v40, 1  ;;  %v577_v10 = vsel %vm496_vm7, %v548_v25, %v576_v34  ;;  %v566_v54 = vsel %vm488_vm9, %v536_v62, %v535_v48  ;;  %v1488_v33 = vrot.slane %v1329_v20, 4 }
 0x143   :  { %v1491_v26 = vrot.slane %v1371_v58, 4  ;;  %v578_v60 = vsel %vm498_vm10, %v549_v28, %v577_v10  ;;  %v567_v2 = vsel %vm490_vm15, %v537_v42, %v566_v54  ;;  %v1496_v4 = vrot.slane %v1472_v24, 4 }
 0x144   :  { %v551_v37 = vperm.slane %v1222_v9, 1  ;;  %v579_v5 = vsel %vm500_vm12, %v550_v29, %v578_v60  ;;  %v568_v44 = vsel %vm492_vm4, %v538_v19, %v567_v2  ;;  %v552_v6 = vperm.slane %v1260_v11, 1 }
 0x145   :  { %v553_v7 = vperm.slane %v1329_v20, 1  ;;  %591 = vrot.lane.b32.xlu1 %v579_v5, %s849_s1  ;;  %v569_v50 = vsel %vm494_vm5, %v539_v49, %v568_v44  ;;  %v554_v12 = vperm.slane %v1488_v33, 1  ;;  %v555_v45 = vperm.slane %v1371_v58, 1 }
 0x146   :  { %v556_v8 = vperm.slane %v1491_v26, 1  ;;  %v570_v53 = vsel %vm496_vm7, %v540_v47, %v569_v50  ;;  %v557_v32 = vperm.slane %v1472_v24, 1  ;;  %v558_v41 = vperm.slane %v1496_v4, 1 }
 0x147   :  { %v580_v27 = vsel %vm488_vm9, %v552_v6, %v551_v37  ;;  %v571_v25 = vsel %vm498_vm10, %v541_v30, %v570_v53  ;;  %v615_v29 = vperm.slane %v1162_v13, 2  ;;  %v616_v61 = vperm.slane %v1188_v51, 2 }
 0x148   :  { %v581_v28 = vsel %vm490_vm15, %v553_v7, %v580_v27  ;;  %v572_v18 = vsel %vm500_vm12, %v542_v52, %v571_v25  ;;  %v617_v62 = vperm.slane %v1282_v63, 2  ;;  %v618_v3 = vperm.slane %v1423_v59, 2 }
 0x149   :  { %v582_v48 = vsel %vm492_vm4, %v554_v12, %v581_v28  ;;  %589 = vrot.lane.b32.xlu0 %v572_v18, %s849_s1  ;;  %v619_v19 = vperm.slane %v1391_v31, 2  ;;  %v620_v49 = vperm.slane %v1426_v16, 2  ;;  %v621_v34 = vperm.slane %v1429_v55, 2 }
 0x14a   :  { %v583_v42 = vsel %vm494_vm5, %v555_v45, %v582_v48  ;;  %v622_v30 = vperm.slane %v1447_v35, 2  ;;  %v645_v52 = vsel %vm488_vm9, %v616_v61, %v615_v29  ;;  %v599_v10 = vperm.slane %v1185_v43, 2 }
 0x14b   :  { %v584_v47 = vsel %vm496_vm7, %v556_v8, %v583_v42  ;;  %v646_v60 = vsel %vm490_vm15, %v617_v62, %v645_v52  ;;  %v600_v2 = vperm.slane %v1210_v1, 2  ;;  %v601_v37 = vperm.slane %v1271_v14, 2 }
 0x14c   :  { %v585_v54 = vsel %vm498_vm10, %v557_v32, %v584_v47  ;;  %v647_v44 = vsel %vm492_vm4, %v618_v3, %v646_v60  ;;  %v602_v6 = vperm.slane %v1321_v56, 2  ;;  %v603_v7 = vperm.slane %v1295_v38, 2 }
 0x14d   :  { %v586_v5 = vsel %vm500_vm12, %v558_v41, %v585_v54  ;;  %v648_v50 = vsel %vm494_vm5, %v619_v19, %v647_v44  ;;  %v604_v12 = vperm.slane %v1333_v57, 2  ;;  %v605_v45 = vperm.slane %v1405_v22, 2 }
 0x14e   :  { %593 = vrot.lane.b32.xlu2 %v586_v5, %s849_s1  ;;  %v606_v8 = vperm.slane %v1433_v46, 2  ;;  %v649_v53 = vsel %vm496_vm7, %v620_v49, %v648_v50  ;;  %v631_v32 = vsel %vm488_vm9, %v600_v2, %v599_v10  ;;  %v607_v41 = vperm.slane %v1235_v17, 2 }
 0x14f   :  { %v608_v27 = vperm.slane %v1263_v39, 2  ;;  %v650_v25 = vsel %vm498_vm10, %v621_v34, %v649_v53  ;;  %v632_v28 = vsel %vm490_vm15, %v601_v37, %v631_v32  ;;  %v609_v29 = vperm.slane %v1245_v23, 2 }
 0x150   :  { %v610_v61 = vperm.slane %v1463_v36, 2  ;;  %v651_v18 = vsel %vm500_vm12, %v622_v30, %v650_v25  ;;  %v633_v48 = vsel %vm492_vm4, %v602_v6, %v632_v28  ;;  %v611_v62 = vperm.slane %v1354_v0, 2 }
 0x151   :  { %v612_v3 = vperm.slane %v1466_v15, 2  ;;  %663 = vrot.lane.b32.xlu1 %v651_v18, %s850_s16  ;;  %v634_v42 = vsel %vm494_vm5, %v603_v7, %v633_v48  ;;  %v613_v19 = vperm.slane %v1451_v21, 2  ;;  %v614_v49 = vperm.slane %v1469_v40, 2 }
 0x152   :  { %v638_v34 = vsel %vm488_vm9, %v608_v27, %v607_v41  ;;  %v635_v47 = vsel %vm496_vm7, %v604_v12, %v634_v42  ;;  %v679_v52 = vperm.slane %v1235_v17, 3  ;;  %v680_v10 = vperm.slane %v1263_v39, 3 }
 0x153   :  { %v639_v30 = vsel %vm490_vm15, %v609_v29, %v638_v34  ;;  %v636_v54 = vsel %vm498_vm10, %v605_v45, %v635_v47  ;;  %v681_v2 = vperm.slane %v1245_v23, 3  ;;  %v682_v37 = vperm.slane %v1463_v36, 3 }
 0x154   :  { %v640_v60 = vsel %vm492_vm4, %v610_v61, %v639_v30  ;;  %v637_v5 = vsel %vm500_vm12, %v606_v8, %v636_v54  ;;  %v683_v6 = vperm.slane %v1354_v0, 3  ;;  %v684_v7 = vperm.slane %v1466_v15, 3 }
 0x155   :  { %v641_v44 = vsel %vm494_vm5, %v611_v62, %v640_v60  ;;  %659 = vrot.lane.b32.xlu0 %v637_v5, %s850_s16  ;;  %v685_v12 = vperm.slane %v1451_v21, 3  ;;  %v686_v45 = vperm.slane %v1469_v40, 3  ;;  %v710_v53 = vsel %vm488_vm9, %v680_v10, %v679_v52 }
 0x156   :  { %v642_v50 = vsel %vm496_vm7, %v612_v3, %v641_v44  ;;  %v711_v8 = vsel %vm490_vm15, %v681_v2, %v710_v53  ;;  %v623_v41 = vperm.slane %v1222_v9, 2  ;;  %v624_v27 = vperm.slane %v1260_v11, 2 }
 0x157   :  { %v643_v32 = vsel %vm498_vm10, %v613_v19, %v642_v50  ;;  %v712_v28 = vsel %vm492_vm4, %v682_v37, %v711_v8  ;;  %v625_v29 = vperm.slane %v1329_v20, 2  ;;  %v626_v61 = vperm.slane %v1488_v33, 2 }
 0x158   :  { %v644_v25 = vsel %vm500_vm12, %v614_v49, %v643_v32  ;;  %v713_v18 = vsel %vm494_vm5, %v683_v6, %v712_v28  ;;  %v627_v48 = vperm.slane %v1371_v58, 2  ;;  %v628_v62 = vperm.slane %v1491_v26, 2 }
 0x159   :  { %661 = vrot.lane.b32.xlu2 %v644_v25, %s850_s16  ;;  %v629_v3 = vperm.slane %v1472_v24, 2  ;;  %v714_v42 = vsel %vm496_vm7, %v684_v7, %v713_v18  ;;  %v630_v19 = vperm.slane %v1496_v4, 2  ;;  %v652_v49 = vsel %vm488_vm9, %v624_v27, %v623_v41 }
 0x15a   :  { %v671_v34 = vperm.slane %v1185_v43, 3  ;;  %v715_v47 = vsel %vm498_vm10, %v685_v12, %v714_v42  ;;  %v653_v30 = vsel %vm490_vm15, %v625_v29, %v652_v49  ;;  %v672_v52 = vperm.slane %v1210_v1, 3 }
 0x15b   :  { %v673_v10 = vperm.slane %v1271_v14, 3  ;;  %v716_v54 = vsel %vm500_vm12, %v686_v45, %v715_v47  ;;  %v654_v60 = vsel %vm492_vm4, %v626_v61, %v653_v30  ;;  %v674_v2 = vperm.slane %v1321_v56, 3 }
 0x15c   :  { %v675_v37 = vperm.slane %v1295_v38, 3  ;;  %733 = vrot.lane.b32.xlu1 %v716_v54, %s851_s17  ;;  %v655_v5 = vsel %vm494_vm5, %v627_v48, %v654_v60  ;;  %v676_v44 = vperm.slane %v1333_v57, 3  ;;  %v677_v6 = vperm.slane %v1405_v22, 3 }
 0x15d   :  { %v678_v7 = vperm.slane %v1433_v46, 3  ;;  %v656_v50 = vsel %vm496_vm7, %v628_v62, %v655_v5  ;;  %v703_v12 = vsel %vm488_vm9, %v672_v52, %v671_v34  ;;  %v695_v45 = vperm.slane %v1222_v9, 3 }
 0x15e   :  { %v696_v53 = vperm.slane %v1260_v11, 3  ;;  %v657_v32 = vsel %vm498_vm10, %v629_v3, %v656_v50  ;;  %v704_v8 = vsel %vm490_vm15, %v673_v10, %v703_v12  ;;  %v697_v41 = vperm.slane %v1329_v20, 3 }
 0x15f   :  { %v698_v27 = vperm.slane %v1488_v33, 3  ;;  %v658_v25 = vsel %vm500_vm12, %v630_v19, %v657_v32  ;;  %v705_v28 = vsel %vm492_vm4, %v674_v2, %v704_v8  ;;  %v699_v29 = vperm.slane %v1371_v58, 3 }
 0x160   :  { %v700_v61 = vperm.slane %v1491_v26, 3  ;;  %665 = vrot.lane.b32.xlu0 %v658_v25, %s850_s16  ;;  %v706_v18 = vsel %vm494_vm5, %v675_v37, %v705_v28  ;;  %v701_v48 = vperm.slane %v1472_v24, 3  ;;  %v702_v62 = vperm.slane %v1496_v4, 3 }
 0x161   :  { %v724_v3 = vsel %vm488_vm9, %v696_v53, %v695_v45  ;;  %v707_v42 = vsel %vm496_vm7, %v676_v44, %v706_v18  ;;  %v687_v49 = vperm.slane %v1162_v13, 3  ;;  %v688_v34 = vperm.slane %v1188_v51, 3 }
 0x162   :  { %v725_v19 = vsel %vm490_vm15, %v697_v41, %v724_v3  ;;  %v708_v47 = vsel %vm498_vm10, %v677_v6, %v707_v42  ;;  %v689_v52 = vperm.slane %v1282_v63, 3  ;;  %v690_v10 = vperm.slane %v1423_v59, 3 }
 0x163   :  { %v726_v30 = vsel %vm492_vm4, %v698_v27, %v725_v19  ;;  %v709_v54 = vsel %vm500_vm12, %v678_v7, %v708_v47  ;;  %v691_v2 = vperm.slane %v1391_v31, 3  ;;  %v692_v37 = vperm.slane %v1426_v16, 3 }
 0x164   :  { %v727_v60 = vsel %vm494_vm5, %v699_v29, %v726_v30  ;;  %731 = vrot.lane.b32.xlu2 %v709_v54, %s851_s17  ;;  %v693_v44 = vperm.slane %v1429_v55, 3  ;;  %v694_v6 = vperm.slane %v1447_v35, 3  ;;  %v717_v50 = vsel %vm488_vm9, %v688_v34, %v687_v49 }
 0x165   :  { %v728_v5 = vsel %vm496_vm7, %v700_v61, %v727_v60  ;;  %v718_v7 = vsel %vm490_vm15, %v689_v52, %v717_v50  ;;  %v456_v45 = vperm.slane %v1185_v43, 0  ;;  %v457_v53 = vperm.slane %v1210_v1, 0 }
 0x166   :  { %v729_v12 = vsel %vm498_vm10, %v701_v48, %v728_v5  ;;  %v719_v8 = vsel %vm492_vm4, %v690_v10, %v718_v7  ;;  %v458_v41 = vperm.slane %v1271_v14, 0  ;;  %v459_v27 = vperm.slane %v1321_v56, 0 }
 0x167   :  { %v730_v32 = vsel %vm500_vm12, %v702_v62, %v729_v12  ;;  %v720_v25 = vsel %vm494_vm5, %v691_v2, %v719_v8  ;;  %v460_v28 = vperm.slane %v1295_v38, 0  ;;  %v462_v29 = vperm.slane %v1405_v22, 0 }
 0x168   :  { %v463_v61 = vperm.slane %v1433_v46, 0  ;;  %v721_v43 = vsel %vm496_vm7, %v692_v37, %v720_v25  ;;  %v489_v1 = vsel %vm488_vm9, %v457_v53, %v456_v45  ;;  %v461_v18 = vperm.slane %v1333_v57, 0 }
 0x169   :  { %v480_v48 = vperm.slane %v1222_v9, 0  ;;  %v722_v14 = vsel %vm498_vm10, %v693_v44, %v721_v43  ;;  %v491_v56 = vsel %vm490_vm15, %v458_v41, %v489_v1  ;;  %v481_v62 = vperm.slane %v1260_v11, 0 }
 0x16a   :  { %v482_v38 = vperm.slane %v1329_v20, 0  ;;  %v723_v22 = vsel %vm500_vm12, %v694_v6, %v722_v14  ;;  %v493_v46 = vsel %vm492_vm4, %v459_v27, %v491_v56  ;;  %v483_v3 = vperm.slane %v1488_v33, 0 }
 0x16b   :  { %v484_v42 = vperm.slane %v1371_v58, 0  ;;  %735 = vrot.lane.b32.xlu0 %v723_v22, %s851_s17  ;;  %v495_v9 = vsel %vm494_vm5, %v460_v28, %v493_v46  ;;  %v516_v57 = vsel %vm488_vm9, %v481_v62, %v480_v48  ;;  %v485_v19 = vperm.slane %v1491_v26, 0 }
 0x16c   :  { %v472_v11 = vperm.slane %v1162_v13, 0  ;;  %737 = vrot.lane.b32.xlu2 %v730_v32, %s851_s17  ;;  %v497_v20 = vsel %vm496_vm7, %v461_v18, %v495_v9  ;;  %v517_v49 = vsel %vm490_vm15, %v482_v38, %v516_v57  ;;  %v473_v33 = vperm.slane %v1188_v51, 0 }
 0x16d   :  { %v474_v58 = vperm.slane %v1282_v63, 0  ;;  %v499_v34 = vsel %vm498_vm10, %v462_v29, %v497_v20  ;;  %v486_v47 = vperm.slane %v1472_v24, 0  ;;  %v518_v30 = vsel %vm492_vm4, %v483_v3, %v517_v49 }
 0x16e   :  { %v475_v26 = vperm.slane %v1423_v59, 0  ;;  %v501_v13 = vsel %vm500_vm12, %v463_v61, %v499_v34  ;;  %v519_v52 = vsel %vm494_vm5, %v484_v42, %v518_v30  ;;  %v476_v10 = vperm.slane %v1391_v31, 0 }
 0x16f   :  { %v487_v54 = vperm.slane %v1496_v4, 0  ;;  %v520_v51 = vsel %vm496_vm7, %v485_v19, %v519_v52  ;;  %v477_v63 = vperm.slane %v1426_v16, 0  ;;  %v509_v60 = vsel %vm488_vm9, %v473_v33, %v472_v11 }
 0x170   :  { %v521_v24 = vsel %vm498_vm10, %v486_v47, %v520_v51  ;;  %v478_v2 = vperm.slane %v1429_v55, 0  ;;  %v510_v59 = vsel %vm490_vm15, %v474_v58, %v509_v60  ;;  %v464_v31 = vperm.slane %v1235_v17, 0 }
 0x171   :  { %v522_v37 = vsel %vm500_vm12, %v487_v54, %v521_v24  ;;  %v511_v5 = vsel %vm492_vm4, %v475_v26, %v510_v59  ;;  %v465_v4 = vperm.slane %v1263_v39, 0  ;;  %v479_v16 = vperm.slane %v1447_v35, 0 }
 0x172   :  { %v512_v44 = vsel %vm494_vm5, %v476_v10, %v511_v5  ;;  %v466_v6 = vperm.slane %v1245_v23, 0  ;;  %v468_v50 = vperm.slane %v1354_v0, 0  ;;  %v467_v12 = vperm.slane %v1463_v36, 0 }
 0x173   :  { %v513_v55 = vsel %vm496_vm7, %v477_v63, %v512_v44  ;;  %v469_v7 = vperm.slane %v1466_v15, 0  ;;  %v502_v45 = vsel %vm488_vm9, %v465_v4, %v464_v31  ;;  %v470_v39 = vperm.slane %v1451_v21, 0 }
 0x174   :  { %v514_v17 = vsel %vm498_vm10, %v478_v2, %v513_v55  ;;  %v503_v53 = vsel %vm490_vm15, %v466_v6, %v502_v45  ;;  %v471_v23 = vperm.slane %v1469_v40, 0  ;;  %vm752_vm9 = vcmask 785408  }
 0x175   :  { %v515_v35 = vsel %vm500_vm12, %v479_v16, %v514_v17  ;;  %v504_v0 = vsel %vm492_vm4, %v467_v12, %v503_v53  ;;  %vm747_vm11 = vcmask 523264  }
 0x176   :  { %v505_v32 = vsel %vm494_vm5, %v468_v50, %v504_v0 }
 0x177   :  { %v506_v36 = vsel %vm496_vm7, %v469_v7, %v505_v32 }
 0x178   :  { %v507_v15 = vsel %vm498_vm10, %v470_v39, %v506_v36 }
 0x179   :  { %v508_v8 = vsel %vm500_vm12, %v471_v23, %v507_v15 }
 0x198   :  { %v588_v41 = vpop.permute.xlu2 %587 }
 0x199   :  { %v743_v61 = vsel %vm28_vm0, %v501_v13, %v588_v41 }
 0x1a8   :  { %v594_v27 = vpop.permute.xlu2 %593 }
 0x1a9   :  { %v746_v38 = vsel %vm28_vm0, %v522_v37, %v594_v27 }
 0x1b3   :  { %v662_v28 = vpop.permute.xlu2 %661 }
 0x1b7   :  { %v592_v25 = vpop.permute.xlu1 %591 }
 0x1b8   :  { %v745_v9 = vsel %vm28_vm0, %v515_v35, %v592_v25 }
 0x1bb   :  { %v590_v21 = vpop.permute.xlu0 %589 }
 0x1bc   :  { %v744_v48 = vsel %vm28_vm0, %v508_v8, %v590_v21 }
 0x1bd   :  { %v749_v56 = vsel %vm747_vm11, %v744_v48, %v662_v28 }
 0x1be   :  { %v732_v43 = vpop.permute.xlu2 %731 }
 0x1c3   :  { %v664_v29 = vpop.permute.xlu1 %663 }
 0x1c4   :  { %v750_v57 = vsel %vm747_vm11, %v745_v9, %v664_v29 }
 0x1c6   :  { %v738_v46 = vpop.permute.xlu2 %737 }
 0x1c7   :  { %v660_v40 = vpop.permute.xlu0 %659 }
 0x1c8   :  { %v748_v1 = vsel %vm747_vm11, %v743_v61, %v660_v40 }
 0x1c9   :  { %v753_v18 = vsel %vm752_vm9, %v748_v1, %v732_v43 }
 0x1ca   :  { %757 = vst [vmem:[#allocation2] sm:$0xff] %v753_v18 }
 0x1ce   :  { %v734_v14 = vpop.permute.xlu1 %733 }
 0x1cf   :  { %v754_v62 = vsel %vm752_vm9, %v749_v56, %v734_v14 }
 0x1d0   :  { %758 = vst [vmem:[#allocation2 + $0x8] sm:$0xff] %v754_v62 }
 0x1d2   :  { %v666_v22 = vpop.permute.xlu0 %665 }
 0x1d3   :  { %v751_v3 = vsel %vm747_vm11, %v746_v38, %v666_v22 }
 0x1d4   :  { %v756_v42 = vsel %vm752_vm9, %v751_v3, %v738_v46 }
 0x1d5   :  { %760 = vst [vmem:[#allocation2 + $0x18] sm:$0xff] %v756_v42 }
 0x1dd   :  { %v736_v19 = vpop.permute.xlu0 %735 }
 0x1de   :  { %v755_v11 = vsel %vm752_vm9, %v750_v57, %v736_v19 }
 0x1df   :  { %759 = vst [vmem:[#allocation2 + $0x10] sm:$0xff] %v755_v11 }
 0x1e0   :  { %773 = dma.vmem_to_hbm [thread:$0]  %s766_s19, 512, %s768_s22, [#allocation3], %s853_s23, %s853_s23, %s854_s24  }
 0x1e1   :  { %846 = dma.done.wait [#allocation3], 512  }
 0x1e2   :  { %847 = vsyncadd [#allocation3], 4294966784 }
 0x1e3   :  { %778 = vsyncpa [#allocation3], 1 }

</bundles_post_ra>
